<compile_context>
chip_gen: v7x
topology: tpu7x:2x2x1
jax: 0.10.0
libtpu: 0.0.40
codegen_flags: <defaults>
</compile_context>

<pallas_src>
import jax
import jax.numpy as jnp
from jax.experimental import pallas as pl
from jax.experimental.pallas import tpu as pltpu


def attention_kernel(x_ref, w_ref, b_ref, ctx_ref, wts_ref):
    # x_ref:   (TB, S, Hp)  VMEM  input rows (H zero-padded to lane width)
    # w_ref:   (1, Hp)      VMEM  linear weight (zero-padded, in x's dtype)
    # b_ref:   (1,)         SMEM  linear bias (f32 scalar)
    # ctx_ref: (TB, Hp)     VMEM  context output (dense lane-width store)
    # wts_ref: (TB, Sp)     VMEM  attention weights (lane-padded, dense store)
    TB, S, Hp = x_ref.shape
    Sp = wts_ref.shape[1]

    x = x_ref[...]                              # keep input dtype (bf16 VALU on v6e/v7x)
    w = w_ref[...]                              # (1, Hp), same dtype as x
    b = b_ref[0]                                # f32 scalar from SMEM

    # H -> 1 projection: VPU multiply in input dtype + f32 lane reduction.
    prod = (x * w[None, :, :]).astype(jnp.float32)        # (TB, S, Hp)
    scores = jnp.tanh(jnp.sum(prod, axis=-1) + b)         # (TB, S) f32

    # Softmax over the sequence axis (lane axis).  tanh bounds scores to
    # [-1, 1], so exp cannot overflow and the max-subtraction is skipped.
    e = jnp.exp(scores)                                   # (TB, S)
    denom = jnp.sum(e, axis=-1, keepdims=True)            # (TB, 1)
    wts = e * pl.reciprocal(denom, approx=False)          # (TB, S) f32

    # Weighted sum over sequence; padded H lanes stay zero.
    wx = (wts[:, :, None].astype(x.dtype) * x).astype(jnp.float32)
    ctx = jnp.sum(wx, axis=1)                             # (TB, Hp) f32

    ctx_ref[...] = ctx.astype(ctx_ref.dtype)

    # Pad weights to the full lane width so the store is a dense vst.
    if Sp == S:
        wts_out = wts
    else:
        wts_out = jnp.concatenate(
            [wts, jnp.zeros((TB, Sp - S), jnp.float32)], axis=-1)
    wts_ref[...] = wts_out.astype(wts_ref.dtype)


def _round_up(x, m):
    return ((x + m - 1) // m) * m


def _plan_tiles(B, S, Hp, Sp, in_itemsize, out_itemsize):
    """Byte-driven batch-tile choice with a per-generation VMEM budget."""
    try:
        vmem_cap = int(pltpu.get_tpu_info().vmem_capacity_bytes)
    except Exception:
        vmem_cap = 64 * 1024 * 1024            # conservative (v7x) fallback
    if vmem_cap <= 64 * 1024 * 1024:
        budget = 28 * 1024 * 1024              # working set per TC on v7x
        vmem_limit = 48 * 1024 * 1024
    else:
        budget = 40 * 1024 * 1024              # v5e / v6e (128 MiB parts)
        vmem_limit = 64 * 1024 * 1024

    S8 = _round_up(S, 8)                       # sublane padding of the x tile
    B8 = _round_up(B, 8)

    # Bytes per batch row in VMEM:
    #   * double-buffered x tile (real input itemsize, H already lane-dense)
    #   * two (S, Hp) f32 broadcast products materialized in the kernel
    #   * double-buffered ctx / wts output tiles
    per_row = (2 * S8 * Hp * in_itemsize
               + 2 * S8 * Hp * 4
               + 2 * (Hp + Sp) * max(out_itemsize, 4))
    fixed = 2 * 1024 * 1024                    # weight tile, scratch, headroom

    tb_bytes = max(8, ((budget - fixed) // per_row) // 8 * 8)

    # v7x megacore: keep >= 2 blocks on the parallel batch axis when possible.
    tb_parallel_cap = max(8, _round_up(pl.cdiv(B8, 2), 8))

    tb = int(min(tb_bytes, tb_parallel_cap, B8))
    tb = max(8, (tb // 8) * 8)
    return tb, vmem_limit


def attention_forward(lstm_output, weight, bias):
    """lstm_output: (B, S, H); weight: (1, H); bias: (1,).
    Returns (context (B, H), weights (B, S, 1)) — same as the PyTorch module."""
    B, S, H = lstm_output.shape
    in_dtype = lstm_output.dtype
    out_dtype = in_dtype

    Hp = _round_up(H, 128)                     # lane-dense input rows / ctx store
    Sp = _round_up(S, 128)                     # lane-dense weights store

    in_itemsize = jnp.dtype(in_dtype).itemsize
    out_itemsize = jnp.dtype(out_dtype).itemsize
    tb, vmem_limit = _plan_tiles(B, S, Hp, Sp, in_itemsize, out_itemsize)

    num_blocks = pl.cdiv(B, tb)
    b_pad = num_blocks * tb

    x = lstm_output
    pad_b = b_pad - B
    pad_h = Hp - H
    if pad_b or pad_h:
        x = jnp.pad(x, ((0, pad_b), (0, 0), (0, pad_h)))

    w_pad = weight.reshape(1, H).astype(in_dtype)
    if pad_h:
        w_pad = jnp.pad(w_pad, ((0, 0), (0, pad_h)))
    b_smem = bias.reshape(1).astype(jnp.float32)

    ctx, wts = pl.pallas_call(
        attention_kernel,
        out_shape=(
            jax.ShapeDtypeStruct((b_pad, Hp), out_dtype),
            jax.ShapeDtypeStruct((b_pad, Sp), out_dtype),
        ),
        grid_spec=pltpu.PrefetchScalarGridSpec(
            num_scalar_prefetch=0,
            grid=(num_blocks,),
            in_specs=[
                pl.BlockSpec((tb, S, Hp), lambda i: (i, 0, 0)),
                pl.BlockSpec((1, Hp), lambda i: (0, 0)),
                pl.BlockSpec(memory_space=pltpu.MemorySpace.SMEM),
            ],
            out_specs=[
                pl.BlockSpec((tb, Hp), lambda i: (i, 0)),
                pl.BlockSpec((tb, Sp), lambda i: (i, 0)),
            ],
        ),
        compiler_params=pltpu.CompilerParams(
            dimension_semantics=("parallel",),   # shards batch blocks across TCs on v7x
            vmem_limit_bytes=vmem_limit,
        ),
    )(x, w_pad, b_smem)

    context = ctx[:B, :H]
    weights = wts[:B, :S].reshape(B, S, 1)
    return context, weights


def attention_reference(lstm_output, weight, bias):
    scores = jnp.tanh(
        jnp.einsum("bsh,oh->bso", lstm_output, weight) + bias[None, None, :]
    )
    weights = jax.nn.softmax(scores, axis=1)
    context = jnp.sum(weights * lstm_output, axis=1)
    return context, weights


if __name__ == "__main__":
    B, S, H = 2, 8, 32  # batch, seq, hidden_dim

    key = jax.random.PRNGKey(0)
    kx, kw, kb = jax.random.split(key, 3)

    lstm_output = jax.random.normal(kx, (B, S, H), dtype=jnp.float32)
    # nn.Linear(hidden_dim, 1): weight (1, H), bias (1,)
    bound = 1.0 / (H ** 0.5)
    weight = jax.random.uniform(kw, (1, H), jnp.float32, -bound, bound)
    bias = jax.random.uniform(kb, (1,), jnp.float32, -bound, bound)

    context, weights = attention_forward(lstm_output, weight, bias)
    jax.block_until_ready((context, weights))

    ref_ctx, ref_wts = attention_reference(lstm_output, weight, bias)
    assert context.shape == (B, H) and weights.shape == (B, S, 1)
    assert jnp.allclose(context, ref_ctx, atol=1e-5, rtol=1e-5)
    assert jnp.allclose(weights, ref_wts, atol=1e-5, rtol=1e-5)

    print("KERNEL_OK")
</pallas_src>

<mosaic_0001>
module attributes {stable_mosaic.version = 11 : i64} {
  func.func @attention_kernel(%arg0: i32, %arg1: memref<8x8x128xf32, #tpu.memory_space<vmem>>, %arg2: memref<1x128xf32, #tpu.memory_space<vmem>>, %arg3: memref<1xf32, #tpu.memory_space<smem>>, %arg4: memref<8x128xf32, #tpu.memory_space<vmem>>, %arg5: memref<8x128xf32, #tpu.memory_space<vmem>>) attributes {dimension_semantics = [#tpu.dimension_semantics<parallel>], iteration_bounds = array<i64: 1>, scalar_prefetch = 0 : i64, scratch_operands = 0 : i64, tpu.core_type = #tpu.core_type<tc>, window_params = [{transform_indices = @transform_0, window_bounds = array<i64: 8, 8, 128>}, {pipeline_mode = #tpu.pipeline_mode<synchronous>, transform_indices = @transform_1, window_bounds = array<i64: 1, 128>}, {transform_indices = @transform_2, window_bounds = array<i64: 1>}, {transform_indices = @transform_3, window_bounds = array<i64: 8, 128>}, {transform_indices = @transform_4, window_bounds = array<i64: 8, 128>}]} {
    %c0 = arith.constant 0 : index
    %c0_0 = arith.constant 0 : index
    %c0_1 = arith.constant 0 : index
    %0 = vector.load %arg1[%c0, %c0_0, %c0_1] : memref<8x8x128xf32, #tpu.memory_space<vmem>>, vector<8x8x128xf32>
    %c0_2 = arith.constant 0 : index
    %c0_3 = arith.constant 0 : index
    %1 = vector.load %arg2[%c0_2, %c0_3] : memref<1x128xf32, #tpu.memory_space<vmem>>, vector<1x128xf32>
    %c0_4 = arith.constant 0 : index
    %2 = memref.load %arg3[%c0_4] : memref<1xf32, #tpu.memory_space<smem>>
    %3 = vector.shape_cast %1 : vector<1x128xf32> to vector<1x1x128xf32>
    %4 = vector.broadcast %3 : vector<1x1x128xf32> to vector<8x8x128xf32>
    %5 = arith.mulf %0, %4 : vector<8x8x128xf32>
    %cst = arith.constant dense<0.000000e+00> : vector<8x8xf32>
    %6 = vector.multi_reduction <add>, %5, %cst [2] : vector<8x8x128xf32> to vector<8x8xf32>
    %7 = vector.broadcast %2 : f32 to vector<8x8xf32>
    %8 = arith.addf %6, %7 : vector<8x8xf32>
    %9 = math.tanh %8 : vector<8x8xf32>
    %10 = math.exp %9 : vector<8x8xf32>
    %cst_5 = arith.constant dense<0.000000e+00> : vector<8xf32>
    %11 = vector.multi_reduction <add>, %10, %cst_5 [1] : vector<8x8xf32> to vector<8xf32>
    %12 = vector.shape_cast %11 : vector<8xf32> to vector<8x1xf32>
    %13 = tpu.reciprocal %12 : vector<8x1xf32> -> vector<8x1xf32>
    %14 = vector.broadcast %13 : vector<8x1xf32> to vector<8x8xf32>
    %15 = arith.mulf %10, %14 : vector<8x8xf32>
    %16 = vector.shape_cast %15 : vector<8x8xf32> to vector<8x8x1xf32>
    %17 = vector.broadcast %16 : vector<8x8x1xf32> to vector<8x8x128xf32>
    %18 = arith.mulf %17, %0 : vector<8x8x128xf32>
    %cst_6 = arith.constant dense<0.000000e+00> : vector<8x128xf32>
    %19 = vector.multi_reduction <add>, %18, %cst_6 [1] : vector<8x8x128xf32> to vector<8x128xf32>
    %c0_7 = arith.constant 0 : index
    %c0_8 = arith.constant 0 : index
    %20 = vector.load %arg4[%c0_7, %c0_8] : memref<8x128xf32, #tpu.memory_space<vmem>>, vector<8x128xf32>
    tpu.vector_store %arg4[%c0_7, %c0_8], %19 {strides = array<i32>} : memref<8x128xf32, #tpu.memory_space<vmem>>, vector<8x128xf32>,
    %cst_9 = arith.constant 0.000000e+00 : f32
    %21 = vector.broadcast %cst_9 : f32 to vector<8x120xf32>
    %22 = tpu.concatenate %15, %21 in 1 : vector<8x8xf32>, vector<8x120xf32> -> vector<8x128xf32>
    %c0_10 = arith.constant 0 : index
    %c0_11 = arith.constant 0 : index
    %23 = vector.load %arg5[%c0_10, %c0_11] : memref<8x128xf32, #tpu.memory_space<vmem>>, vector<8x128xf32>
    tpu.vector_store %arg5[%c0_10, %c0_11], %22 {strides = array<i32>} : memref<8x128xf32, #tpu.memory_space<vmem>>, vector<8x128xf32>,
    return
  }
  func.func @transform_0(%arg0: i32) -> (i32, i32, i32) {
    %c0_i32 = arith.constant 0 : i32
    %c0_i32_0 = arith.constant 0 : i32
    %c0_i32_1 = arith.constant 0 : i32
    return %arg0, %c0_i32, %c0_i32_0 : i32, i32, i32
  }
  func.func @transform_1(%arg0: i32) -> (i32, i32) {
    %c0_i32 = arith.constant 0 : i32
    %c0_i32_0 = arith.constant 0 : i32
    %c0_i32_1 = arith.constant 0 : i32
    return %c0_i32, %c0_i32_0 : i32, i32
  }
  func.func @transform_2(%arg0: i32) -> i32 {
    %c0_i32 = arith.constant 0 : i32
    %c0_i32_0 = arith.constant 0 : i32
    return %c0_i32 : i32
  }
  func.func @transform_3(%arg0: i32) -> (i32, i32) {
    %c0_i32 = arith.constant 0 : i32
    %c0_i32_0 = arith.constant 0 : i32
    return %arg0, %c0_i32 : i32, i32
  }
  func.func @transform_4(%arg0: i32) -> (i32, i32) {
    %c0_i32 = arith.constant 0 : i32
    %c0_i32_0 = arith.constant 0 : i32
    return %arg0, %c0_i32 : i32, i32
  }
}

</mosaic_0001>

<bundles_post_ra>
// kernel: tpu_custom_call.1
= control target key start
LH: loop header
LB: loop body
LE: loop exit
PB: predicated region body
PF: predicated region fallthrough
CT: control target
= control target key end

     0   :  { %11 = vsyncpa [#allocation4], 0  ;;  %s673_s0 = inlined_call_operand.hbm [shape: f32[8,8,128], index: 0, kind: input, shape index: {}]   ;;  %s674_s1 = inlined_call_operand.vmem [shape: f32[1,128], index: 1, kind: input, shape index: {}]   ;;  %s675_s2 = inlined_call_operand.<no memory space> [shape: f32[1], index: 2, kind: input, shape index: {}]   ;;  %s676_s3 = inlined_call_operand.hbm [shape: f32[8,128], index: 3, kind: output, shape index: {0}]   ;;  %s677_s4 = inlined_call_operand.hbm [shape: f32[8,128], index: 4, kind: output, shape index: {1}]  }
   0x1   :  { %12 = vsyncpa [#allocation5], 0 }
   0x2   :  { %13 = vsyncpa [#allocation8], 0  ;;  %s516_s15 = smov [#allocation3]   ;;  %s444_s19 = scalar_lea.hbm %s673_s0, 1024 }
   0x3   :  { %s19_s16 = sshll.u32 %s516_s15, 4  ;;  %p445_p0 = scmp.ne.s32.totalorder %s673_s0, %s444_s19  ;;  %s20_s16 = int_to_ptr.vmem [resolvable:$true] %s19_s16 }
   0x4   :  { %p448_p1 = scmp.lt.u32.totalorder %s444_s19, %s673_s0 }
   0x6   :  { %p450_p2 = pnand %p448_p1, %p445_p0 }
   0x8   :  { %453 = shalt.err (!%p450_p2)
}
   0x9   :  { %s454_s24 = scalar_lea.vmem %s20_s16, 1024  ;;  %p459_p4 = scmp.lt.s32.totalorder %s20_s16, %s20_s16 }
   0xa   :  { %p455_p3 = scmp.ne.s32.totalorder %s20_s16, %s454_s24  ;;  %p460_p5 = scmp.lt.s32.totalorder %s454_s24, %s454_s24 }
   0xc   :  { %p461_p6 = por %p460_p5, %p459_p4 }
   0xe   :  { %p462_p7 = pnand %p461_p6, %p455_p3 }
  0x10   :  { %465 = shalt.err (!%p462_p7)
}
  0x11   :  { %s517_s25 = smov 128   ;;  %s518_s26 = smov 8  }
  0x12   :  { %25 = dma.hbm_to_vmem [thread:$0]  %s673_s0, 1024, %s20_s16, [#allocation4], %s517_s25, %s517_s25, %s518_s26  }
  0x13   :  { %510 = dma.done.wait [#allocation4], 1024  }
  0x14   :  { %511 = vsyncadd [#allocation4], 4294966272  ;;  %v559_v0 = vld [vmem:[#allocation3] sm:$0xff]  ;;  %v564_v2 = vld [vmem:[#allocation3 + $0x10] sm:$0xff]  ;;  %v73_v17 = vstv %s675_s2  ;;  %v114_v41 = vlaneseq  ;;  %vm148_vm0 = vcmask 1041409   ;;  %vm150_vm1 = vcmask 1042434  }
  0x15   :  { %v401_v1 = vld [vmem:[%s674_s1] ss:$0 sm:$0xff]  ;;  %v568_v5 = vld [vmem:[#allocation3 + $0x8] sm:$0xff]  ;;  %v570_v6 = vld [vmem:[#allocation3 + $0x18] sm:$0xff]  ;;  %vm152_vm2 = vcmask 1043459   ;;  %vm154_vm3 = vcmask 1044484  }
  0x16   :  { %v49_v3 = vmul.f32 %v401_v1, %v559_v0  ;;  %v51_v4 = vmul.f32 %v401_v1, %v564_v2  ;;  %v50_v7 = vmul.f32 %v401_v1, %v568_v5  ;;  %v52_v8 = vmul.f32 %v401_v1, %v570_v6  ;;  %v574_v9 = vld [vmem:[#allocation3 + $0x20] sm:$0xff]  ;;  %v576_v10 = vld [vmem:[#allocation3 + $0x28] sm:$0xff]  ;;  %v580_v13 = vld [vmem:[#allocation3 + $0x30] sm:$0xff]  ;;  %s520_s2 = smov [#allocation7]  }
  0x17   :  { %v53_v11 = vmul.f32 %v401_v1, %v574_v9  ;;  %v54_v12 = vmul.f32 %v401_v1, %v576_v10  ;;  %v582_v14 = vld [vmem:[#allocation3 + $0x38] sm:$0xff]  ;;  %v55_v15 = vmul.f32 %v401_v1, %v580_v13  ;;  %v115_v46 = vand.u32 127, %v114_v41  ;;  %s388_s5 = sshll.u32 %s520_s2, 4  ;;  %s389_s5 = int_to_ptr.vmem [resolvable:$true] %s388_s5 }
  0x18   :  { %57 = vadd.xlane.f32.xlu0 %v49_v3  ;;  %61 = vadd.xlane.f32.xlu1 %v51_v4  ;;  %v56_v16 = vmul.f32 %v401_v1, %v582_v14  ;;  %v589_v47 = vshrl.u32 %v114_v41, 7  ;;  %vm156_vm4 = vcmask 1045509   ;;  %vm158_vm5 = vcmask 1046534   ;;  %s466_s6 = scalar_lea.vmem %s389_s5, 128  ;;  %p471_p9 = scmp.lt.s32.totalorder %s389_s5, %s389_s5 }
  0x19   :  { %vm160_vm6 = vcmask 1047559   ;;  %vm163_vm7 = vcmask 64512   ;;  %p467_p8 = scmp.ne.s32.totalorder %s389_s5, %s466_s6  ;;  %p472_p10 = scmp.lt.s32.totalorder %s466_s6, %s466_s6 }
  0x1a   :  { %v592_v52 = vsub.s32 %v115_v46, %v589_v47 }
  0x1b   :  { %p473_p11 = por %p472_p10, %p471_p9 }
  0x1c   :  { %59 = vadd.xlane.f32.xlu0 %v50_v7  ;;  %63 = vadd.xlane.f32.xlu1 %v52_v8 }
  0x1d   :  { %p474_p12 = pnand %p473_p11, %p467_p8 }
  0x20   :  { %65 = vadd.xlane.f32.xlu0 %v53_v11  ;;  %67 = vadd.xlane.f32.xlu1 %v54_v12 }
  0x24   :  { %69 = vadd.xlane.f32.xlu0 %v55_v15  ;;  %71 = vadd.xlane.f32.xlu1 %v56_v16 }
  0xa5   :  { %v58_v18 = vpop.xlane.xlu0 %57  ;;  %v62_v19 = vpop.xlane.xlu1 %61 }
  0xa6   :  { %v74_v20 = vadd.f32 %v73_v17, %v58_v18  ;;  %v76_v21 = vadd.f32 %v73_v17, %v62_v19 }
  0xa8   :  { %410 = vtanh.f32 %v74_v20 }
  0xa9   :  { %412 = vtanh.f32 %v76_v21  ;;  %v60_v22 = vpop.xlane.xlu0 %59  ;;  %v64_v23 = vpop.xlane.xlu1 %63 }
  0xaa   :  { %v75_v24 = vadd.f32 %v73_v17, %v60_v22  ;;  %v77_v25 = vadd.f32 %v73_v17, %v64_v23  ;;  %v519_v22 = vmov 0  }
  0xab   :  { %409 = vset.pattern.permute.xlu0 %v519_v22  ;;  %408 = vset.pattern.permute.xlu1 %v519_v22 }
  0xac   :  { %414 = vtanh.f32 %v75_v24  ;;  %v175_v24 = vsub.s32 1, %v589_v47 }
  0xad   :  { %416 = vtanh.f32 %v77_v25  ;;  %v66_v26 = vpop.xlane.xlu0 %65  ;;  %v68_v27 = vpop.xlane.xlu1 %67  ;;  %v171_v25 = vsub.s32 0, %v589_v47 }
  0xae   :  { %v78_v28 = vadd.f32 %v73_v17, %v66_v26  ;;  %v79_v29 = vadd.f32 %v73_v17, %v68_v27  ;;  %v179_v26 = vsub.s32 2, %v589_v47 }
  0xb0   :  { %418 = vtanh.f32 %v78_v28 }
  0xb1   :  { %420 = vtanh.f32 %v79_v29  ;;  %v70_v30 = vpop.xlane.xlu0 %69  ;;  %v72_v31 = vpop.xlane.xlu1 %71 }
  0xb2   :  { %v411_v32 = vpop.eup %410  ;;  %v80_v33 = vadd.f32 %v73_v17, %v70_v30  ;;  %v81_v36 = vadd.f32 %v73_v17, %v72_v31 }
  0xb3   :  { %v413_v34 = vpop.eup %412  ;;  %v90_v35 = vmul.f32 1.442695, %v411_v32 }
  0xb4   :  { %v94_v37 = vmul.f32 1.442695, %v413_v34  ;;  %422 = vtanh.f32 %v80_v33  ;;  %v183_v33 = vsub.s32 3, %v589_v47 }
  0xb5   :  { %424 = vpow2.f32 %v90_v35 }
  0xb6   :  { %v415_v38 = vpop.eup %414  ;;  %426 = vtanh.f32 %v81_v36  ;;  %v187_v36 = vsub.s32 4, %v589_v47 }
  0xb7   :  { %v417_v39 = vpop.eup %416  ;;  %v92_v40 = vmul.f32 1.442695, %v415_v38  ;;  %428 = vpow2.f32 %v94_v37 }
  0xb8   :  { %v96_v42 = vmul.f32 1.442695, %v417_v39  ;;  %v191_v39 = vsub.s32 5, %v589_v47 }
  0xb9   :  { %430 = vpow2.f32 %v92_v40 }
  0xba   :  { %v419_v43 = vpop.eup %418  ;;  %432 = vpow2.f32 %v96_v42  ;;  %v195_v42 = vsub.s32 6, %v589_v47 }
  0xbb   :  { %v421_v44 = vpop.eup %420  ;;  %v98_v45 = vmul.f32 1.442695, %v419_v43 }
  0xbc   :  { %v100_v48 = vmul.f32 1.442695, %v421_v44 }
  0xbd   :  { %434 = vpow2.f32 %v98_v45  ;;  %v199_v45 = vsub.s32 7, %v589_v47 }
  0xbe   :  { %v423_v49 = vpop.eup %422  ;;  %436 = vpow2.f32 %v100_v48 }
  0xbf   :  { %v102_v50 = vmul.f32 1.442695, %v423_v49  ;;  %v425_v51 = vpop.eup %424 }
  0xc0   :  { %v427_v53 = vpop.eup %426  ;;  %v119_v58 = vrot.slane %v425_v51, %v592_v52 }
  0xc1   :  { %438 = vpow2.f32 %v102_v50  ;;  %v429_v54 = vpop.eup %428  ;;  %v104_v55 = vmul.f32 1.442695, %v427_v53 }
  0xc2   :  { %v127_v60 = vrot.slane %v429_v54, %v592_v52 }
  0xc3   :  { %v431_v56 = vpop.eup %430  ;;  %440 = vpow2.f32 %v104_v55 }
  0xc4   :  { %v433_v57 = vpop.eup %432  ;;  %v123_v59 = vrot.slane %v431_v56, %v592_v52 }
  0xc5   :  { %v131_v61 = vrot.slane %v433_v57, %v592_v52 }
  0xc6   :  { %v149_v62 = vsel %vm148_vm0, %v123_v59, %v119_v58 }
  0xc7   :  { %v435_v63 = vpop.eup %434  ;;  %v151_v1 = vsel %vm150_vm1, %v127_v60, %v149_v62 }
  0xc8   :  { %v437_v3 = vpop.eup %436  ;;  %v135_v4 = vrot.slane %v435_v63, %v592_v52  ;;  %v153_v7 = vsel %vm152_vm2, %v131_v61, %v151_v1 }
  0xc9   :  { %v139_v8 = vrot.slane %v437_v3, %v592_v52 }
  0xca   :  { %v155_v11 = vsel %vm154_vm3, %v135_v4, %v153_v7 }
  0xcb   :  { %v439_v12 = vpop.eup %438  ;;  %v157_v16 = vsel %vm156_vm4, %v139_v8, %v155_v11 }
  0xcc   :  { %v143_v15 = vrot.slane %v439_v12, %v592_v52 }
  0xcd   :  { %v441_v17 = vpop.eup %440 }
  0xce   :  { %v159_v18 = vsel %vm158_vm5, %v143_v15, %v157_v16  ;;  %v147_v19 = vrot.slane %v441_v17, %v592_v52 }
  0xd0   :  { %v161_v20 = vsel %vm160_vm6, %v147_v19, %v159_v18 }
  0xd1   :  { %v164_v21 = vsel %vm163_vm7, %v161_v20, 0.0 }
  0xd2   :  { %165 = vadd.xlane.f32.xlu0 %v164_v21 }
 0x15f   :  { %v166_v23 = vpop.xlane.xlu0 %165 }
 0x160   :  { %442 = vrcp.f32 %v166_v23 }
 0x16a   :  { %v443_v27 = vpop.eup %442 }
 0x16b   :  { %v176_v28 = vrot.slane %v443_v27, %v175_v24  ;;  %v172_v29 = vrot.slane %v443_v27, %v171_v25  ;;  %v180_v32 = vrot.slane %v443_v27, %v179_v26  ;;  %v184_v35 = vrot.slane %v443_v27, %v183_v33 }
 0x16c   :  { %v188_v38 = vrot.slane %v443_v27, %v187_v36  ;;  %v192_v41 = vrot.slane %v443_v27, %v191_v39  ;;  %v196_v44 = vrot.slane %v443_v27, %v195_v42  ;;  %v200_v48 = vrot.slane %v443_v27, %v199_v45 }
 0x16d   :  { %v210_v30 = vmul.f32 %v431_v56, %v176_v28  ;;  %v209_v31 = vmul.f32 %v425_v51, %v172_v29  ;;  %v211_v34 = vmul.f32 %v429_v54, %v180_v32  ;;  %v212_v37 = vmul.f32 %v433_v57, %v184_v35 }
 0x16e   :  { %v213_v40 = vmul.f32 %v435_v63, %v188_v38  ;;  %v214_v43 = vmul.f32 %v437_v3, %v192_v41  ;;  %v215_v46 = vmul.f32 %v439_v12, %v196_v44  ;;  %v216_v49 = vmul.f32 %v441_v17, %v200_v48 }
 0x16f   :  { %224 = vperm.xlu0 %409, %v210_v30   ;;  %219 = vperm.xlu1 %408, %v209_v31  }
 0x173   :  { %229 = vperm.xlu1 %408, %v211_v34  }
 0x177   :  { %234 = vperm.xlu1 %408, %v212_v37  }
 0x17b   :  { %239 = vperm.xlu1 %408, %v213_v40  }
 0x17f   :  { %244 = vperm.xlu1 %408, %v214_v43  }
 0x183   :  { %249 = vperm.xlu1 %408, %v215_v46  }
 0x187   :  { %254 = vperm.xlu1 %408, %v216_v49  }
 0x1ee   :  { %v220_v50 = vpop.permute.xlu1 %219  ;;  %v225_v51 = vpop.permute.xlu0 %224 }
 0x1ef   :  { %v258_v53 = vmul.f32 %v225_v51, %v568_v5  ;;  %v257_v54 = vmul.f32 %v220_v50, %v559_v0  ;;  %v337_v5 = vrot.slane %v225_v51, %v592_v52  ;;  %v333_v0 = vrot.slane %v220_v50, %v592_v52 }
 0x1f1   :  { %v271_v57 = vrot.slane %v258_v53, 4  ;;  %v265_v58 = vrot.slane %v257_v54, 4  ;;  %v362_v19 = vsel %vm148_vm0, %v337_v5, %v333_v0 }
 0x1f2   :  { %v230_v55 = vpop.permute.xlu1 %229 }
 0x1f3   :  { %v259_v56 = vmul.f32 %v230_v55, %v564_v2  ;;  %v272_v62 = vadd.f32 %v271_v57, %v258_v53  ;;  %v266_v63 = vadd.f32 %v265_v58, %v257_v54  ;;  %v341_v15 = vrot.slane %v230_v55, %v592_v52 }
 0x1f5   :  { %v277_v60 = vrot.slane %v259_v56, 4  ;;  %v273_v8 = vrot.slane %v272_v62, 2  ;;  %v267_v2 = vrot.slane %v266_v63, 2  ;;  %v363_v27 = vsel %vm150_vm1, %v341_v15, %v362_v19 }
 0x1f6   :  { %v235_v59 = vpop.permute.xlu1 %234 }
 0x1f7   :  { %v260_v47 = vmul.f32 %v235_v59, %v570_v6  ;;  %v278_v3 = vadd.f32 %v277_v60, %v259_v56  ;;  %v345_v17 = vrot.slane %v235_v59, %v592_v52  ;;  %v274_v22 = vadd.f32 %v273_v8, %v272_v62 }
 0x1f8   :  { %v268_v23 = vadd.f32 %v267_v2, %v266_v63 }
 0x1f9   :  { %v283_v61 = vrot.slane %v260_v47, 4  ;;  %v279_v16 = vrot.slane %v278_v3, 2  ;;  %v364_v30 = vsel %vm152_vm2, %v345_v17, %v363_v27  ;;  %v275_v36 = vrot.slane %v274_v22, 1 }
 0x1fa   :  { %v240_v1 = vpop.permute.xlu1 %239  ;;  %v269_v37 = vrot.slane %v268_v23, 1 }
 0x1fb   :  { %v261_v4 = vmul.f32 %v240_v1, %v574_v9  ;;  %v284_v7 = vadd.f32 %v283_v61, %v260_v47  ;;  %v349_v20 = vrot.slane %v240_v1, %v592_v52  ;;  %v280_v29 = vadd.f32 %v279_v16, %v278_v3 }
 0x1fc   :  { %v276_v51 = vadd.f32 %v275_v36, %v274_v22  ;;  %v270_v55 = vadd.f32 %v269_v37, %v268_v23 }
 0x1fd   :  { %v289_v11 = vrot.slane %v261_v4, 4  ;;  %v285_v9 = vrot.slane %v284_v7, 2  ;;  %v365_v33 = vsel %vm154_vm3, %v349_v20, %v364_v30  ;;  %v281_v44 = vrot.slane %v280_v29, 1 }
 0x1fe   :  { %v245_v12 = vpop.permute.xlu1 %244 }
 0x1ff   :  { %v262_v6 = vmul.f32 %v245_v12, %v576_v10  ;;  %v290_v18 = vadd.f32 %v289_v11, %v261_v4  ;;  %v353_v25 = vrot.slane %v245_v12, %v592_v52  ;;  %v286_v32 = vadd.f32 %v285_v9, %v284_v7 }
 0x201   :  { %v295_v21 = vrot.slane %v262_v6, 4  ;;  %v291_v24 = vrot.slane %v290_v18, 2  ;;  %v366_v39 = vsel %vm156_vm4, %v353_v25, %v365_v33  ;;  %v287_v46 = vrot.slane %v286_v32, 1 }
 0x202   :  { %v250_v26 = vpop.permute.xlu1 %249 }
 0x203   :  { %v296_v28 = vadd.f32 %v295_v21, %v262_v6  ;;  %v263_v10 = vmul.f32 %v250_v26, %v580_v13  ;;  %v357_v31 = vrot.slane %v250_v26, %v592_v52  ;;  %v292_v38 = vadd.f32 %v291_v24, %v290_v18 }
 0x205   :  { %v297_v34 = vrot.slane %v296_v28, 2  ;;  %v301_v35 = vrot.slane %v263_v10, 4  ;;  %v367_v45 = vsel %vm158_vm5, %v357_v31, %v366_v39  ;;  %v293_v53 = vrot.slane %v292_v38, 1 }
 0x206   :  { %v255_v40 = vpop.permute.xlu1 %254 }
 0x207   :  { %v298_v41 = vadd.f32 %v297_v34, %v296_v28  ;;  %v302_v13 = vadd.f32 %v301_v35, %v263_v10  ;;  %v264_v42 = vmul.f32 %v255_v40, %v582_v14  ;;  %v361_v43 = vrot.slane %v255_v40, %v592_v52 }
 0x208   :  { %v282_v14 = vadd.f32 %v281_v44, %v280_v29 }
 0x209   :  { %v303_v48 = vrot.slane %v302_v13, 2  ;;  %v307_v49 = vrot.slane %v264_v42, 4  ;;  %v368_v50 = vsel %vm160_vm6, %v361_v43, %v367_v45  ;;  %v299_v56 = vrot.slane %v298_v41, 1 }
 0x20a   :  { %v370_v54 = vsel %vm163_vm7, %v368_v50, 0.0 }
 0x20b   :  { %v304_v57 = vadd.f32 %v303_v48, %v302_v13  ;;  %v308_v58 = vadd.f32 %v307_v49, %v264_v42  ;;  %371 = vst [vmem:[#allocation7] sm:$0xff] %v370_v54 }
 0x20c   :  { %477 = shalt.err (!%p474_p12)
}
 0x20d   :  { %s478_s9 = scalar_lea.hbm %s677_s4, 128 }
 0x20e   :  { %p479_p13 = scmp.ne.s32.totalorder %s677_s4, %s478_s9  ;;  %p482_p0 = scmp.lt.u32.totalorder %s478_s9, %s677_s4 }
 0x210   :  { %p484_p1 = pnand %p482_p0, %p479_p13 }
 0x212   :  { %487 = shalt.err (!%p484_p1)
}
 0x213   :  { %391 = dma.vmem_to_hbm [thread:$0]  %s389_s5, 128, %s677_s4, [#allocation8]   ;;  %v288_v52 = vadd.f32 %v287_v46, %v286_v32  ;;  %v305_v59 = vrot.slane %v304_v57, 1  ;;  %v309_v47 = vrot.slane %v308_v58, 2  ;;  %v294_v60 = vadd.f32 %v293_v53, %v292_v38 }
 0x214   :  { %v321_v61 = vsel %vm148_vm0, %v276_v51, %v270_v55  ;;  %v300_v62 = vadd.f32 %v299_v56, %v298_v41  ;;  %s521_s16 = smov [#allocation6]  }
 0x215   :  { %v310_v63 = vadd.f32 %v309_v47, %v308_v58  ;;  %v322_v1 = vsel %vm150_vm1, %v282_v14, %v321_v61  ;;  %v306_v3 = vadd.f32 %v305_v59, %v304_v57  ;;  %s378_s17 = sshll.u32 %s521_s16, 4  ;;  %s379_s17 = int_to_ptr.vmem [resolvable:$true] %s378_s17 }
 0x216   :  { %v323_v5 = vsel %vm152_vm2, %v288_v52, %v322_v1  ;;  %s488_s4 = scalar_lea.vmem %s379_s17, 128  ;;  %p493_p3 = scmp.lt.s32.totalorder %s379_s17, %s379_s17 }
 0x217   :  { %v311_v4 = vrot.slane %v310_v63, 1  ;;  %v324_v0 = vsel %vm154_vm3, %v294_v60, %v323_v5  ;;  %p489_p2 = scmp.ne.s32.totalorder %s379_s17, %s488_s4  ;;  %p494_p4 = scmp.lt.s32.totalorder %s488_s4, %s488_s4 }
 0x218   :  { %v325_v8 = vsel %vm156_vm4, %v300_v62, %v324_v0 }
 0x219   :  { %v312_v7 = vadd.f32 %v311_v4, %v310_v63  ;;  %v326_v2 = vsel %vm158_vm5, %v306_v3, %v325_v8  ;;  %p495_p5 = por %p494_p4, %p493_p3 }
 0x21b   :  { %v327_v11 = vsel %vm160_vm6, %v312_v7, %v326_v2  ;;  %p496_p6 = pnand %p495_p5, %p489_p2 }
 0x21c   :  { %329 = vst [vmem:[#allocation6] sm:$0xff] %v327_v11 }
 0x21d   :  { %499 = shalt.err (!%p496_p6)
}
 0x21e   :  { %s500_s20 = scalar_lea.hbm %s676_s3, 128 }
 0x21f   :  { %p501_p7 = scmp.ne.s32.totalorder %s676_s3, %s500_s20  ;;  %p504_p8 = scmp.lt.u32.totalorder %s500_s20, %s676_s3 }
 0x221   :  { %p506_p9 = pnand %p504_p8, %p501_p7 }
 0x223   :  { %509 = shalt.err (!%p506_p9)
}
 0x224   :  { %381 = dma.vmem_to_hbm [thread:$0]  %s379_s17, 128, %s676_s3, [#allocation5]  }
 0x225   :  { %512 = dma.done.wait [#allocation5], 128  }
 0x226   :  { %513 = vsyncadd [#allocation5], 4294967168 }
 0x227   :  { %514 = dma.done.wait [#allocation8], 128  }
 0x228   :  { %515 = vsyncadd [#allocation8], 4294967168 }
 0x229   :  { %398 = vsyncpa [#allocation4], 1 }
 0x22a   :  { %399 = vsyncpa [#allocation5], 1 }
 0x22b   :  { %400 = vsyncpa [#allocation8], 1 }

</bundles_post_ra>
